<compile_context>
chip_gen: v7x
topology: tpu7x:2x2x1
jax: 0.10.0
libtpu: 0.0.40
codegen_flags: <defaults>
</compile_context>

<pallas_src>
import functools

import jax
import jax.numpy as jnp
from jax.experimental import pallas as pl
from jax.experimental.pallas import tpu as pltpu


def _round_up(x, m):
    return (x + m - 1) // m * m


def _cde_func_kernel(z_ref, w1_ref, b1_ref, w2_ref, b2_ref, out_ref):
    # linear1: bf16 x bf16 -> f32 accumulate on the MXU, epilogue in f32.
    h = jnp.dot(z_ref[...], w1_ref[...], preferred_element_type=jnp.float32)
    h = jnp.maximum(h + b1_ref[...], 0.0)                 # bias + relu (f32)
    # linear2: cast the activation to bf16 for the MXU, accumulate in f32.
    o = jnp.dot(h.astype(jnp.bfloat16), w2_ref[...],
                preferred_element_type=jnp.float32)
    out_ref[...] = jnp.tanh(o + b2_ref[...]).astype(out_ref.dtype)


def _choose_tile_b(out_dim_pad, hidden):
    """Largest batch tile whose working set fits a conservative VMEM budget.

    Budget targets ~24 MiB so the kernel is portable to v7x (32 MiB scoped
    default / 64 MiB physical) without touching vmem_limit_bytes.
    """
    budget = 24 * 1024 * 1024
    tile = 512
    while tile > 8:
        need = (
            2 * tile * hidden * 2            # double-buffered z tile (bf16)
            + 2 * tile * out_dim_pad * 4     # double-buffered out tile (f32)
            + tile * 128 * 4                 # live intermediate h (f32)
            + 2 * (hidden * 128 * 2 + 128 * out_dim_pad * 2)  # weights (bf16)
            + 2 * (128 * 4 + out_dim_pad * 4)                 # biases (f32)
        )
        if need <= budget:
            break
        tile //= 2
    return tile


@functools.partial(jax.jit, static_argnames=("input_channels", "hidden_channels"))
def cde_func_forward(t, z, params, *, input_channels, hidden_channels):
    """Pallas equivalent of CDEFunc.forward(t, z).

    t is unused (kept for API parity with the PyTorch module).
    z: (B, hidden_channels) float32.
    Returns (B, hidden_channels, input_channels) float32.

    Note: for the real Neural-CDE use case (many tiny solver-step calls) the
    cheapest fusion is to stack the per-step z's along the batch dim and make
    ONE call here — the batch-tiled grid then amortizes weight residency and
    launch overhead across all evaluations.
    """
    del t
    w1, b1, w2, b2 = params
    B, H = z.shape
    assert H == hidden_channels
    out_dim = input_channels * hidden_channels
    out_dim_pad = _round_up(out_dim, 128)       # lane-dense output tile

    # One-time operand prep (outside the kernel): bf16 MXU operands, padded
    # lane-dense second-layer weight/bias, batch padded to the tile size.
    tile_b = _choose_tile_b(out_dim_pad, H)
    tile_b = min(tile_b, _round_up(B, 8))
    b_pad = _round_up(B, tile_b)

    z_p = jnp.zeros((b_pad, H), jnp.bfloat16).at[:B].set(z.astype(jnp.bfloat16))
    w1_b = w1.astype(jnp.bfloat16)                                  # (H, 128)
    w2_b = jnp.zeros((128, out_dim_pad), jnp.bfloat16)
    w2_b = w2_b.at[:, :out_dim].set(w2.astype(jnp.bfloat16))        # (128, Np)
    b1_f = b1.astype(jnp.float32)                                   # (1, 128)
    b2_f = jnp.zeros((1, out_dim_pad), jnp.float32).at[:, :out_dim].set(b2)

    grid = (b_pad // tile_b,)

    # TODO(synk): for very large H*C, add a second grid axis over out_dim_pad
    # (w2/b2/out indexed by j, h cached in VMEM scratch under pl.when(j == 0))
    # and single-buffer the invariant weights with pipeline_mode=pl.Buffered(1).
    out_flat = pl.pallas_call(
        _cde_func_kernel,
        out_shape=jax.ShapeDtypeStruct((b_pad, out_dim_pad), jnp.float32),
        grid_spec=pltpu.PrefetchScalarGridSpec(
            num_scalar_prefetch=0,
            grid=grid,
            in_specs=[
                pl.BlockSpec((tile_b, H), lambda i: (i, 0)),          # z tile
                pl.BlockSpec((H, 128), lambda i: (0, 0)),             # w1 (resident)
                pl.BlockSpec((1, 128), lambda i: (0, 0)),             # b1 (resident)
                pl.BlockSpec((128, out_dim_pad), lambda i: (0, 0)),   # w2 (resident)
                pl.BlockSpec((1, out_dim_pad), lambda i: (0, 0)),     # b2 (resident)
            ],
            out_specs=pl.BlockSpec((tile_b, out_dim_pad), lambda i: (i, 0)),
        ),
        compiler_params=pltpu.CompilerParams(
            dimension_semantics=("parallel",)),   # megacore sharding on v7x
    )(z_p, w1_b, b1_f, w2_b, b2_f)

    # Strip padding; z.view(B, hidden_channels, input_channels) equivalent.
    return out_flat[:B, :out_dim].reshape(B, hidden_channels, input_channels)


def init_params(key, input_channels, hidden_channels):
    """Deterministic parameter init matching the torch.nn.Linear shapes.

    torch: linear1.weight (128, hidden), linear2.weight (hidden*input, 128).
    We store them transposed for right-multiplication (x @ W).
    """
    k1, k2, k3, k4 = jax.random.split(key, 4)
    out_dim = input_channels * hidden_channels
    lim1 = 1.0 / jnp.sqrt(hidden_channels)
    lim2 = 1.0 / jnp.sqrt(128.0)
    w1 = jax.random.uniform(k1, (hidden_channels, 128), jnp.float32, -lim1, lim1)
    b1 = jax.random.uniform(k2, (1, 128), jnp.float32, -lim1, lim1)
    w2 = jax.random.uniform(k3, (128, out_dim), jnp.float32, -lim2, lim2)
    b2 = jax.random.uniform(k4, (1, out_dim), jnp.float32, -lim2, lim2)
    return (w1, b1, w2, b2)


def _reference(z, params):
    w1, b1, w2, b2 = params
    h = jnp.maximum(z @ w1 + b1, 0.0)
    return jnp.tanh(h @ w2 + b2)


if __name__ == "__main__":
    input_channels = 4
    hidden_channels = 32
    batch = 8

    key = jax.random.PRNGKey(0)
    kp, kz = jax.random.split(key)
    params = init_params(kp, input_channels, hidden_channels)
    z = jax.random.normal(kz, (batch, hidden_channels), jnp.float32)
    t = jnp.float32(0.0)  # unused, as in the PyTorch module

    out = cde_func_forward(t, z, params,
                           input_channels=input_channels,
                           hidden_channels=hidden_channels)
    out = jax.block_until_ready(out)

    # Sanity check against a pure-f32 JAX reference.  The kernel feeds the MXU
    # bf16 operands (f32 accumulation + f32 epilogue), so use a bf16-level
    # tolerance; the tanh-bounded output keeps absolute error small.
    ref = _reference(z, params).reshape(batch, hidden_channels, input_channels)
    assert out.shape == (batch, hidden_channels, input_channels)
    assert jnp.allclose(out, ref, atol=3e-2, rtol=3e-2), float(
        jnp.max(jnp.abs(out - ref)))

    print("KERNEL_OK")
</pallas_src>

<mosaic_0001>
module attributes {stable_mosaic.version = 11 : i64} {
  func.func @_cde_func_kernel(%arg0: i32, %arg1: memref<8x32xbf16, #tpu.memory_space<vmem>>, %arg2: memref<32x128xbf16, #tpu.memory_space<vmem>>, %arg3: memref<1x128xf32, #tpu.memory_space<vmem>>, %arg4: memref<128x128xbf16, #tpu.memory_space<vmem>>, %arg5: memref<1x128xf32, #tpu.memory_space<vmem>>, %arg6: memref<8x128xf32, #tpu.memory_space<vmem>>) attributes {dimension_semantics = [#tpu.dimension_semantics<parallel>], iteration_bounds = array<i64: 1>, scalar_prefetch = 0 : i64, scratch_operands = 0 : i64, tpu.core_type = #tpu.core_type<tc>, window_params = [{transform_indices = @transform_0, window_bounds = array<i64: 8, 32>}, {pipeline_mode = #tpu.pipeline_mode<synchronous>, transform_indices = @transform_1, window_bounds = array<i64: 32, 128>}, {pipeline_mode = #tpu.pipeline_mode<synchronous>, transform_indices = @transform_2, window_bounds = array<i64: 1, 128>}, {pipeline_mode = #tpu.pipeline_mode<synchronous>, transform_indices = @transform_3, window_bounds = array<i64: 128, 128>}, {pipeline_mode = #tpu.pipeline_mode<synchronous>, transform_indices = @transform_4, window_bounds = array<i64: 1, 128>}, {transform_indices = @transform_5, window_bounds = array<i64: 8, 128>}]} {
    %c0 = arith.constant 0 : index
    %c0_0 = arith.constant 0 : index
    %0 = vector.load %arg1[%c0, %c0_0] : memref<8x32xbf16, #tpu.memory_space<vmem>>, vector<8x32xbf16>
    %c0_1 = arith.constant 0 : index
    %c0_2 = arith.constant 0 : index
    %1 = vector.load %arg2[%c0_1, %c0_2] : memref<32x128xbf16, #tpu.memory_space<vmem>>, vector<32x128xbf16>
    %cst = arith.constant dense<0.000000e+00> : vector<8x128xf32>
    %2 = tpu.matmul %0, %1, %cst {dimension_numbers = #tpu.dot_dimension_numbers<[1], [0], [0], [1], [0, 0, 1, 1], [], []>} : vector<8x32xbf16>, vector<32x128xbf16>, vector<8x128xf32> -> vector<8x128xf32>
    %c0_3 = arith.constant 0 : index
    %c0_4 = arith.constant 0 : index
    %3 = vector.load %arg3[%c0_3, %c0_4] : memref<1x128xf32, #tpu.memory_space<vmem>>, vector<1x128xf32>
    %4 = vector.broadcast %3 : vector<1x128xf32> to vector<8x128xf32>
    %5 = arith.addf %2, %4 : vector<8x128xf32>
    %cst_5 = arith.constant 0.000000e+00 : f32
    %6 = vector.broadcast %cst_5 : f32 to vector<8x128xf32>
    %7 = arith.maximumf %5, %6 : vector<8x128xf32>
    %8 = arith.truncf %7 : vector<8x128xf32> to vector<8x128xbf16>
    %c0_6 = arith.constant 0 : index
    %c0_7 = arith.constant 0 : index
    %9 = vector.load %arg4[%c0_6, %c0_7] : memref<128x128xbf16, #tpu.memory_space<vmem>>, vector<128x128xbf16>
    %cst_8 = arith.constant dense<0.000000e+00> : vector<8x128xf32>
    %10 = tpu.matmul %8, %9, %cst_8 {dimension_numbers = #tpu.dot_dimension_numbers<[1], [0], [0], [1], [0, 0, 1, 1], [], []>} : vector<8x128xbf16>, vector<128x128xbf16>, vector<8x128xf32> -> vector<8x128xf32>
    %c0_9 = arith.constant 0 : index
    %c0_10 = arith.constant 0 : index
    %11 = vector.load %arg5[%c0_9, %c0_10] : memref<1x128xf32, #tpu.memory_space<vmem>>, vector<1x128xf32>
    %12 = vector.broadcast %11 : vector<1x128xf32> to vector<8x128xf32>
    %13 = arith.addf %10, %12 : vector<8x128xf32>
    %14 = math.tanh %13 : vector<8x128xf32>
    %c0_11 = arith.constant 0 : index
    %c0_12 = arith.constant 0 : index
    %15 = vector.load %arg6[%c0_11, %c0_12] : memref<8x128xf32, #tpu.memory_space<vmem>>, vector<8x128xf32>
    tpu.vector_store %arg6[%c0_11, %c0_12], %14 {strides = array<i32>} : memref<8x128xf32, #tpu.memory_space<vmem>>, vector<8x128xf32>,
    return
  }
  func.func @transform_0(%arg0: i32) -> (i32, i32) {
    %c0_i32 = arith.constant 0 : i32
    %c0_i32_0 = arith.constant 0 : i32
    return %arg0, %c0_i32 : i32, i32
  }
  func.func @transform_1(%arg0: i32) -> (i32, i32) {
    %c0_i32 = arith.constant 0 : i32
    %c0_i32_0 = arith.constant 0 : i32
    %c0_i32_1 = arith.constant 0 : i32
    return %c0_i32, %c0_i32_0 : i32, i32
  }
  func.func @transform_2(%arg0: i32) -> (i32, i32) {
    %c0_i32 = arith.constant 0 : i32
    %c0_i32_0 = arith.constant 0 : i32
    %c0_i32_1 = arith.constant 0 : i32
    return %c0_i32, %c0_i32_0 : i32, i32
  }
  func.func @transform_3(%arg0: i32) -> (i32, i32) {
    %c0_i32 = arith.constant 0 : i32
    %c0_i32_0 = arith.constant 0 : i32
    %c0_i32_1 = arith.constant 0 : i32
    return %c0_i32, %c0_i32_0 : i32, i32
  }
  func.func @transform_4(%arg0: i32) -> (i32, i32) {
    %c0_i32 = arith.constant 0 : i32
    %c0_i32_0 = arith.constant 0 : i32
    %c0_i32_1 = arith.constant 0 : i32
    return %c0_i32, %c0_i32_0 : i32, i32
  }
  func.func @transform_5(%arg0: i32) -> (i32, i32) {
    %c0_i32 = arith.constant 0 : i32
    %c0_i32_0 = arith.constant 0 : i32
    return %arg0, %c0_i32 : i32, i32
  }
}

</mosaic_0001>

<bundles_post_ra>
// kernel: cde_func_forward.1
= control target key start
LH: loop header
LB: loop body
LE: loop exit
PB: predicated region body
PF: predicated region fallthrough
CT: control target
= control target key end

     0   :  { %v275_v0 = vmov 0.0   ;;  %vm276_vm0 = vmmov 0   ;;  %vm45_vm1 = vcmask 261120   ;;  %s349_s1 = inlined_call_operand.vmem [shape: bf16[32,128], index: 1, kind: input, shape index: {}]   ;;  %s350_s3 = inlined_call_operand.vmem [shape: bf16[128,128], index: 3, kind: input, shape index: {}]   ;;  %s351_s0 = inlined_call_operand.vmem [shape: bf16[8,32], index: 0, kind: input, shape index: {}]   ;;  %s352_s2 = inlined_call_operand.vmem [shape: f32[1,128], index: 2, kind: input, shape index: {}]   ;;  %s353_s4 = inlined_call_operand.vmem [shape: f32[1,128], index: 4, kind: input, shape index: {}]   ;;  %s354_s5 = inlined_call_operand.vmem [shape: f32[8,128], index: 5, kind: output, shape index: {}]  }
   0x1   :  { %233 = vmatprep.subr.bf16.mxu0 %v275_v0  ;;  %v263_v1 = vld [vmem:[%s349_s1] sm:$0xff]   ;;  %237 = vmatprep.mubr.msk.bf16.mxu0 %vm276_vm0, %v275_v0  ;;  %v264_v2 = vld [vmem:[%s349_s1 + $0x8] sm:$0xff]   ;;  %v267_v6 = vld [vmem:[%s350_s3 + $0x10] sm:$0xff]  }
   0x2   :  { %241 = vmatprep.subr.bf16.mxu1 %v275_v0  ;;  %257 = vmatprep.mubr.msk.bf16.mxu1 %vm276_vm0, %v275_v0  ;;  %v265_v3 = vld [vmem:[%s350_s3] sm:$0xff]   ;;  %v266_v4 = vld [vmem:[%s350_s3 + $0x8] sm:$0xff]   ;;  %v268_v7 = vld [vmem:[%s350_s3 + $0x18] sm:$0xff]  }
   0x3   :  { %234 = vmatpush3.bf16.msra.mxu0 %v263_v1  ;;  %242 = vmatpush3.bf16.msra.mxu1 %v265_v3  ;;  %v21_v5 = vld [vmem:[%s351_s0] sm:$0xf]  ;;  %v270_v9 = vld [vmem:[%s350_s3 + $0x28] sm:$0xff]   ;;  %v271_v10 = vld [vmem:[%s350_s3 + $0x30] sm:$0xff]  }
   0x4   :  { %235 = vmatprep.subr.bf16.mxu0 %v275_v0  ;;  %243 = vmatprep.subr.bf16.mxu1 %v275_v0  ;;  %v269_v8 = vld [vmem:[%s350_s3 + $0x20] sm:$0xff]   ;;  %v272_v11 = vld [vmem:[%s350_s3 + $0x38] sm:$0xff]  }
   0x5   :  { %v208_v12 = vld [vmem:[%s352_s2] ss:$0 sm:$0xff] }
   0x6   :  { %v212_v20 = vld [vmem:[%s353_s4] ss:$0 sm:$0xff] }
   0x7   :  { %236 = vmatpush3.bf16.msra.mxu0 %v264_v2  ;;  %244 = vmatpush3.bf16.msra.mxu1 %v266_v4 }
   0x8   :  { %245 = vmatprep.subr.bf16.mxu1 %v275_v0 }
   0xa   :  { %238 = vmatmul.mubr.msk.bf16.vlgmr.msra.gmra.mrb[0].mxu0 %vm45_vm1, %v21_v5 }
   0xb   :  { %246 = vmatpush3.bf16.msra.mxu1 %v267_v6 }
   0xc   :  { %247 = vmatprep.subr.bf16.mxu1 %v275_v0 }
   0xf   :  { %248 = vmatpush3.bf16.msra.mxu1 %v268_v7 }
  0x10   :  { %249 = vmatprep.subr.bf16.mxu1 %v275_v0 }
  0x13   :  { %250 = vmatpush3.bf16.msra.mxu1 %v269_v8 }
  0x14   :  { %251 = vmatprep.subr.bf16.mxu1 %v275_v0 }
  0x17   :  { %252 = vmatpush3.bf16.msra.mxu1 %v270_v9 }
  0x18   :  { %253 = vmatprep.subr.bf16.mxu1 %v275_v0 }
  0x1b   :  { %254 = vmatpush3.bf16.msra.mxu1 %v271_v10 }
  0x1c   :  { %255 = vmatprep.subr.bf16.mxu1 %v275_v0 }
  0x1f   :  { %256 = vmatpush3.bf16.msra.mxu1 %v272_v11 }
  0xdd   :  { %v83_v13 = vpop.f32.mrb[0].mxu0 }
  0xde   :  { %v84_v14 = vadd.f32 %v208_v12, %v83_v13  ;;  %v239_v15 = vpop.f32.mrb[1].mxu0 }
  0xdf   :  { %v86_v16 = vpop.f32.mrb[2].mxu0 }
  0xe0   :  { %v89_v17 = vmax.f32 %v84_v14, 0.0  ;;  %v240_v18 = vpop.f32.mrb[3].mxu0 }
  0xe2   :  { %v90_v19 = vpack.c.bf16 %v89_v17, %v89_v17 }
  0xe4   :  { %258 = vmatmul.mubr.bf16.vlgmr.msra.gmra.mrb[0].mxu1 %v90_v19 }
 0x1b7   :  { %v196_v21 = vpop.f32.mrb[0].mxu1 }
 0x1b8   :  { %v197_v22 = vadd.f32 %v212_v20, %v196_v21  ;;  %v259_v23 = vpop.f32.mrb[1].mxu1 }
 0x1b9   :  { %v199_v24 = vpop.f32.mrb[2].mxu1 }
 0x1ba   :  { %273 = vtanh.f32 %v197_v22  ;;  %v260_v25 = vpop.f32.mrb[3].mxu1 }
 0x1c4   :  { %v274_v26 = vpop.eup %273 }
 0x1c5   :  { %203 = vst [vmem:[%s354_s5] sm:$0xff] %v274_v26 }

</bundles_post_ra>
